<compile_context>
chip_gen: v5e
topology: v5e:2x2
jax: 0.10.0
libtpu: 0.0.40
codegen_flags: <defaults>
</compile_context>

<pallas_src>
import functools

import jax
import jax.numpy as jnp
from jax import lax
from jax.experimental import pallas as pl
from jax.experimental.pallas import tpu as pltpu


_INV_SQRT2 = 0.7071067811865476


def _gelu_erf(h):
    # exact (erf) GELU -- torch.nn.GELU() default
    return 0.5 * h * (1.0 + lax.erf(h * _INV_SQRT2))


def _layernorm(y, gamma, beta, eps):
    # PyTorch LayerNorm: biased variance, eps inside rsqrt.
    mu = jnp.mean(y, axis=-1, keepdims=True)
    var = jnp.mean((y - mu) * (y - mu), axis=-1, keepdims=True)
    return (y - mu) * lax.rsqrt(var + eps) * gamma + beta


# --------------------------------------------------------------------------- #
# Kernels
# --------------------------------------------------------------------------- #
def _mlp_kernel_single(x_ref, w1_ref, b1_ref, w2_ref, b2_ref, g_ref, beta_ref,
                       o_ref, *, eps, gelu_dtype):
    """Whole MLP for one token tile; weights are VMEM-resident (no hidden chunking)."""
    h = jnp.dot(x_ref[...], w1_ref[...], preferred_element_type=jnp.float32)
    h = h + b1_ref[...]                                  # f32 bias add
    h = _gelu_erf(h.astype(gelu_dtype))                  # GELU in compute dtype
    # dropout(p=0.0) is an identity in eval semantics.
    # TODO(synk): dropout with p > 0 (training mode) not implemented.
    y = jnp.dot(h.astype(w2_ref.dtype), w2_ref[...],
                preferred_element_type=jnp.float32) + b2_ref[...]
    o_ref[...] = _layernorm(y, g_ref[...], beta_ref[...], eps).astype(o_ref.dtype)


def _mlp_kernel_chunked(x_ref, w1_ref, b1_ref, w2_ref, b2_ref, g_ref, beta_ref,
                        o_ref, acc_ref, *, eps, gelu_dtype):
    """One (token-tile, hidden-chunk) grid step; fc2 reduced into an f32 accumulator."""
    k = pl.program_id(1)

    @pl.when(k == 0)
    def _init():
        acc_ref[...] = jnp.zeros_like(acc_ref)

    h = jnp.dot(x_ref[...], w1_ref[...], preferred_element_type=jnp.float32)
    h = h + b1_ref[...]
    h = _gelu_erf(h.astype(gelu_dtype))
    # dropout(p=0.0) identity.  TODO(synk): dropout with p > 0 not implemented.
    acc_ref[...] += jnp.dot(h.astype(w2_ref.dtype), w2_ref[...],
                            preferred_element_type=jnp.float32)

    @pl.when(k == pl.num_programs(1) - 1)
    def _finalize():
        y = acc_ref[...] + b2_ref[...]
        o_ref[...] = _layernorm(y, g_ref[...], beta_ref[...], eps).astype(o_ref.dtype)


# --------------------------------------------------------------------------- #
# Builders
# --------------------------------------------------------------------------- #
def _build_single(args, *, tm, d_in, d_hidden, d_out, tokens_p, out_dtype, eps,
                  vmem_limit, gelu_dtype, use_buffered_hint):
    def const_spec(shape):
        if use_buffered_hint:
            # Constant block index across the whole grid -> single buffer suffices.
            return pl.BlockSpec(shape, lambda i: (0, 0),
                                pipeline_mode=pl.Buffered(1))
        return pl.BlockSpec(shape, lambda i: (0, 0))

    return pl.pallas_call(
        functools.partial(_mlp_kernel_single, eps=eps, gelu_dtype=gelu_dtype),
        out_shape=jax.ShapeDtypeStruct((tokens_p, d_out), out_dtype),
        grid_spec=pltpu.PrefetchScalarGridSpec(
            num_scalar_prefetch=0,
            grid=(tokens_p // tm,),
            in_specs=[
                pl.BlockSpec((tm, d_in), lambda i: (i, 0)),   # x tile
                const_spec((d_in, d_hidden)),                 # w1 (resident)
                const_spec((1, d_hidden)),                    # b1
                const_spec((d_hidden, d_out)),                # w2 (resident)
                const_spec((1, d_out)),                       # b2
                const_spec((1, d_out)),                       # ln gamma
                const_spec((1, d_out)),                       # ln beta
            ],
            out_specs=pl.BlockSpec((tm, d_out), lambda i: (i, 0)),
        ),
        compiler_params=pltpu.CompilerParams(
            dimension_semantics=("parallel",),
            vmem_limit_bytes=int(vmem_limit)),
    )(*args)


def _build_chunked(args, *, tm, tk, d_in, d_hidden, d_out, tokens_p, out_dtype,
                   eps, vmem_limit, gelu_dtype, use_buffered_hint):
    def const_spec(shape):
        if use_buffered_hint:
            return pl.BlockSpec(shape, lambda i, k: (0, 0),
                                pipeline_mode=pl.Buffered(1))
        return pl.BlockSpec(shape, lambda i, k: (0, 0))

    in_specs = [
        pl.BlockSpec((tm, d_in), lambda i, k: (i, 0)),    # x tile
        pl.BlockSpec((d_in, tk), lambda i, k: (0, k)),    # w1 slice
        pl.BlockSpec((1, tk), lambda i, k: (0, k)),       # b1 slice
        pl.BlockSpec((tk, d_out), lambda i, k: (k, 0)),   # w2 slice
        const_spec((1, d_out)),                           # b2
        const_spec((1, d_out)),                           # ln gamma
        const_spec((1, d_out)),                           # ln beta
    ]
    return pl.pallas_call(
        functools.partial(_mlp_kernel_chunked, eps=eps, gelu_dtype=gelu_dtype),
        out_shape=jax.ShapeDtypeStruct((tokens_p, d_out), out_dtype),
        grid_spec=pltpu.PrefetchScalarGridSpec(
            num_scalar_prefetch=0,
            grid=(tokens_p // tm, d_hidden // tk),
            in_specs=in_specs,
            out_specs=pl.BlockSpec((tm, d_out), lambda i, k: (i, 0)),
            scratch_shapes=[pltpu.VMEM((tm, d_out), jnp.float32)],
        ),
        compiler_params=pltpu.CompilerParams(
            dimension_semantics=("parallel", "arbitrary"),
            vmem_limit_bytes=int(vmem_limit)),
    )(*args)


# --------------------------------------------------------------------------- #
# Tiling heuristics
# --------------------------------------------------------------------------- #
def _round_up(x, m):
    return -(-x // m) * m


def _est_single(tm, d_in, d_hidden, d_out, x_bytes, w_bytes, o_bytes):
    """Buffer-count-aware VMEM estimate for the weights-resident path."""
    return (2 * tm * d_in * x_bytes                 # x tile, double-buffered
            + (d_in + d_out) * d_hidden * w_bytes   # resident weights, 1 buffer
            + 2 * tm * d_out * o_bytes              # out tile, double-buffered
            + tm * d_hidden * (4 + x_bytes)         # f32 h + compute-dtype copy
            + tm * d_out * 4                        # f32 y before the store
            + 4 * (d_hidden + 3 * d_out))           # biases / LN params (tiny)


def _est_chunked(tm, tk, d_in, d_out, x_bytes, w_bytes, o_bytes):
    return (2 * tm * d_in * x_bytes
            + 2 * d_in * tk * w_bytes               # w1 slice (double-buffered along k)
            + 2 * tk * d_out * w_bytes              # w2 slice
            + 2 * tm * d_out * o_bytes
            + tm * d_out * 4                        # f32 accumulator scratch
            + tm * tk * (4 + x_bytes)               # f32 h + compute-dtype copy
            + 4 * (tk + 3 * d_out))


def _pick_single_tm(tokens, sub, budget, est_fn, cap=512):
    tm = min(_round_up(tokens, sub), cap)
    if tokens > sub:
        # Weights are resident, so splitting the token axis is ~free; guarantee
        # >= 2 token tiles so the "parallel" axis shards across v7x's 2 TCs.
        tm = min(tm, _round_up(-(-tokens // 2), sub))
    tm = max(sub, tm)
    while tm > sub and est_fn(tm) > budget:
        tm = max(sub, _round_up(tm // 2, sub))
    return tm


def _chunk_candidates(d_hidden):
    all128 = [c for c in range(d_hidden - 128, 127, -128) if d_hidden % c == 0]
    pref = [c for c in all128 if c % 256 == 0]      # 2x256^2 MXU alignment
    return pref if pref else all128


def _pick_chunked(tokens, sub, d_in, d_hidden, d_out, x_bytes, w_bytes, o_bytes,
                  budget):
    est = lambda tm, tk: _est_chunked(tm, tk, d_in, d_out, x_bytes, w_bytes, o_bytes)
    # In the weight-streaming regime intensity ~= tm FLOP/byte; target 1024 rows
    # (above the v6e ridge).  tokens >= 2048 still yields >= 2 token tiles.
    tm_target = max(sub, min(_round_up(tokens, sub), 1024))
    best = None
    for tk in _chunk_candidates(d_hidden):
        tm = tm_target
        while tm > sub and est(tm, tk) > budget:
            tm = max(sub, _round_up(tm // 2, sub))
        if est(tm, tk) <= budget:
            if best is None or tm > best[0]:
                best = (tm, tk)
            if tm == tm_target:
                break
    if best is None:
        best = (sub, 128 if d_hidden % 128 == 0 else d_hidden)
    return best


# --------------------------------------------------------------------------- #
# Public wrapper
# --------------------------------------------------------------------------- #
def mlp_pallas(x, w1, b1, w2, b2, gamma, beta, *, eps=1e-6,
               compute_dtype=jnp.bfloat16, tile_tokens=None, hidden_chunk=None):
    """x: (..., in_features); weights stored (in, out)."""
    orig_shape = x.shape
    out_dtype = x.dtype
    d_in = orig_shape[-1]
    d_hidden = w1.shape[1]
    d_out = w2.shape[1]

    x2 = x.reshape(-1, d_in).astype(compute_dtype)
    tokens = x2.shape[0]

    # Cast matmul operands in the wrapper (bf16 MXU path, half the weight DMA
    # bytes); biases / LN params stay f32, accumulation is f32 in-kernel.
    w1c = w1.astype(compute_dtype)
    w2c = w2.astype(compute_dtype)
    b1r = b1.astype(jnp.float32).reshape(1, d_hidden)
    b2r = b2.astype(jnp.float32).reshape(1, d_out)
    gr = gamma.astype(jnp.float32).reshape(1, d_out)
    br = beta.astype(jnp.float32).reshape(1, d_out)

    x_bytes = jnp.dtype(compute_dtype).itemsize
    w_bytes = x_bytes
    o_bytes = jnp.dtype(out_dtype).itemsize
    sub = 8 if (x_bytes >= 4 and o_bytes >= 4) else 16   # sublane quantum

    # Generation-aware VMEM budget (~3/4 of per-core VMEM; 48 MiB on v7x).
    try:
        vmem_cap = int(pltpu.get_tpu_info().vmem_capacity_bytes)
    except Exception:
        vmem_cap = 64 * 1024 * 1024
    budget = min(vmem_cap * 3 // 4, 100 * 1024 * 1024)

    est_single = lambda tm: _est_single(tm, d_in, d_hidden, d_out,
                                        x_bytes, w_bytes, o_bytes)

    # Prefer the weights-resident single-chunk path whenever it fits the budget;
    # chunk the hidden dim only when it doesn't (weight traffic then streams).
    if hidden_chunk is not None:
        use_single = int(hidden_chunk) >= d_hidden
    else:
        use_single = (est_single(sub) <= budget) or (d_hidden % 128 != 0)

    if use_single:
        if tile_tokens is not None:
            tm = max(sub, _round_up(int(tile_tokens), sub))
        else:
            tm = _pick_single_tm(tokens, sub, budget, est_single)
        tokens_p = _round_up(tokens, tm)
        if tokens_p != tokens:
            x2 = jnp.pad(x2, ((0, tokens_p - tokens), (0, 0)))
        args = (x2, w1c, b1r, w2c, b2r, gr, br)
        build = functools.partial(
            _build_single, args, tm=tm, d_in=d_in, d_hidden=d_hidden, d_out=d_out,
            tokens_p=tokens_p, out_dtype=out_dtype, eps=eps, vmem_limit=budget)
    else:
        est_chunk = lambda tm, tk: _est_chunked(tm, tk, d_in, d_out,
                                                x_bytes, w_bytes, o_bytes)
        if hidden_chunk is not None:
            tk = int(hidden_chunk)
            assert d_hidden % tk == 0, "hidden_chunk must divide hidden_features"
            tm = max(sub, min(_round_up(tokens, sub), 1024))
            while tm > sub and est_chunk(tm, tk) > budget:
                tm = max(sub, _round_up(tm // 2, sub))
        else:
            tm, tk = _pick_chunked(tokens, sub, d_in, d_hidden, d_out,
                                   x_bytes, w_bytes, o_bytes, budget)
        if tile_tokens is not None:
            tm = max(sub, _round_up(int(tile_tokens), sub))
        tokens_p = _round_up(tokens, tm)
        if tokens_p != tokens:
            x2 = jnp.pad(x2, ((0, tokens_p - tokens), (0, 0)))
        args = (x2, w1c, b1r, w2c, b2r, gr, br)
        build = functools.partial(
            _build_chunked, args, tm=tm, tk=tk, d_in=d_in, d_hidden=d_hidden,
            d_out=d_out, tokens_p=tokens_p, out_dtype=out_dtype, eps=eps,
            vmem_limit=budget)

    try:
        out = build(gelu_dtype=compute_dtype, use_buffered_hint=True)
    except Exception:
        # Fallback: drop only the Buffered(1) hint and the compute-dtype GELU,
        # but KEEP the vmem_limit override (tiles were sized against `budget`).
        out = build(gelu_dtype=jnp.float32, use_buffered_hint=False)

    out = out[:tokens]
    return out.reshape(orig_shape[:-1] + (d_out,))


# --------------------------------------------------------------------------- #
# Reference + demo
# --------------------------------------------------------------------------- #
def _reference(x, w1, b1, w2, b2, gamma, beta, eps=1e-6):
    h = x @ w1 + b1
    h = jax.nn.gelu(h, approximate=False)
    y = h @ w2 + b2
    mu = jnp.mean(y, axis=-1, keepdims=True)
    var = jnp.mean((y - mu) ** 2, axis=-1, keepdims=True)
    return (y - mu) / jnp.sqrt(var + eps) * gamma + beta


if __name__ == "__main__":
    # Small shapes consistent with the module: in -> hidden -> out per token.
    batch, seq = 2, 8
    in_features, hidden_features, out_features = 32, 64, 32

    key = jax.random.PRNGKey(0)
    kx, k1, kb1, k2, kb2 = jax.random.split(key, 5)

    x = jax.random.normal(kx, (batch, seq, in_features), dtype=jnp.float32)

    # Deterministic synthetic parameter init (shapes from nn.Linear / nn.LayerNorm).
    w1 = jax.random.normal(k1, (in_features, hidden_features), dtype=jnp.float32) * 0.05
    b1 = jax.random.normal(kb1, (hidden_features,), dtype=jnp.float32) * 0.01
    w2 = jax.random.normal(k2, (hidden_features, out_features), dtype=jnp.float32) * 0.05
    b2 = jax.random.normal(kb2, (out_features,), dtype=jnp.float32) * 0.01
    gamma = jnp.ones((out_features,), dtype=jnp.float32)
    beta = jnp.zeros((out_features,), dtype=jnp.float32)

    ref = _reference(x, w1, b1, w2, b2, gamma, beta)

    # f32 compute path: tight check against the f32 reference.
    out_f32 = jax.block_until_ready(
        mlp_pallas(x, w1, b1, w2, b2, gamma, beta, compute_dtype=jnp.float32))
    assert out_f32.shape == (batch, seq, out_features)
    assert jnp.allclose(out_f32, ref, atol=1e-4, rtol=1e-4), "f32 path mismatch"

    # Default fast path: bf16 MXU operands with f32 accumulation (looser tolerance).
    out_bf16 = jax.block_until_ready(mlp_pallas(x, w1, b1, w2, b2, gamma, beta))
    assert out_bf16.shape == (batch, seq, out_features)
    assert jnp.allclose(out_bf16, ref, atol=5e-2, rtol=5e-2), "bf16 path mismatch"

    # Exercise the hidden-chunked reduction path as well (forces 2 hidden chunks).
    out_chunked = jax.block_until_ready(
        mlp_pallas(x, w1, b1, w2, b2, gamma, beta, compute_dtype=jnp.float32,
                   hidden_chunk=hidden_features // 2))
    assert jnp.allclose(out_chunked, ref, atol=1e-4, rtol=1e-4), "chunked path mismatch"

    print("KERNEL_OK")
</pallas_src>

<mosaic_0001>
module attributes {stable_mosaic.version = 11 : i64} {
  func.func @_mlp_kernel_single(%arg0: i32, %arg1: memref<8x32xf32, #tpu.memory_space<vmem>>, %arg2: memref<32x64xf32, #tpu.memory_space<vmem>>, %arg3: memref<1x64xf32, #tpu.memory_space<vmem>>, %arg4: memref<64x32xf32, #tpu.memory_space<vmem>>, %arg5: memref<1x32xf32, #tpu.memory_space<vmem>>, %arg6: memref<1x32xf32, #tpu.memory_space<vmem>>, %arg7: memref<1x32xf32, #tpu.memory_space<vmem>>, %arg8: memref<8x32xf32, #tpu.memory_space<vmem>>) attributes {dimension_semantics = [#tpu.dimension_semantics<parallel>], iteration_bounds = array<i64: 2>, scalar_prefetch = 0 : i64, scratch_operands = 0 : i64, tpu.core_type = #tpu.core_type<tc>, window_params = [{transform_indices = @transform_0, window_bounds = array<i64: 8, 32>}, {pipeline_mode = #tpu.pipeline_mode<synchronous>, transform_indices = @transform_1, window_bounds = array<i64: 32, 64>}, {pipeline_mode = #tpu.pipeline_mode<synchronous>, transform_indices = @transform_2, window_bounds = array<i64: 1, 64>}, {pipeline_mode = #tpu.pipeline_mode<synchronous>, transform_indices = @transform_3, window_bounds = array<i64: 64, 32>}, {pipeline_mode = #tpu.pipeline_mode<synchronous>, transform_indices = @transform_4, window_bounds = array<i64: 1, 32>}, {pipeline_mode = #tpu.pipeline_mode<synchronous>, transform_indices = @transform_5, window_bounds = array<i64: 1, 32>}, {pipeline_mode = #tpu.pipeline_mode<synchronous>, transform_indices = @transform_6, window_bounds = array<i64: 1, 32>}, {transform_indices = @transform_7, window_bounds = array<i64: 8, 32>}]} {
    %c0 = arith.constant 0 : index
    %c0_0 = arith.constant 0 : index
    %0 = vector.load %arg1[%c0, %c0_0] : memref<8x32xf32, #tpu.memory_space<vmem>>, vector<8x32xf32>
    %c0_1 = arith.constant 0 : index
    %c0_2 = arith.constant 0 : index
    %1 = vector.load %arg2[%c0_1, %c0_2] : memref<32x64xf32, #tpu.memory_space<vmem>>, vector<32x64xf32>
    %cst = arith.constant dense<0.000000e+00> : vector<8x64xf32>
    %2 = tpu.matmul %0, %1, %cst {dimension_numbers = #tpu.dot_dimension_numbers<[1], [0], [0], [1], [0, 0, 1, 1], [], []>} : vector<8x32xf32>, vector<32x64xf32>, vector<8x64xf32> -> vector<8x64xf32>
    %c0_3 = arith.constant 0 : index
    %c0_4 = arith.constant 0 : index
    %3 = vector.load %arg3[%c0_3, %c0_4] : memref<1x64xf32, #tpu.memory_space<vmem>>, vector<1x64xf32>
    %4 = vector.broadcast %3 : vector<1x64xf32> to vector<8x64xf32>
    %5 = arith.addf %2, %4 : vector<8x64xf32>
    %cst_5 = arith.constant 5.000000e-01 : f32
    %6 = vector.broadcast %cst_5 : f32 to vector<8x64xf32>
    %7 = arith.mulf %6, %5 : vector<8x64xf32>
    %cst_6 = arith.constant 0.707106769 : f32
    %8 = vector.broadcast %cst_6 : f32 to vector<8x64xf32>
    %9 = arith.mulf %5, %8 : vector<8x64xf32>
    %10 = math.erf %9 : vector<8x64xf32>
    %cst_7 = arith.constant 1.000000e+00 : f32
    %11 = vector.broadcast %cst_7 : f32 to vector<8x64xf32>
    %12 = arith.addf %11, %10 : vector<8x64xf32>
    %13 = arith.mulf %7, %12 : vector<8x64xf32>
    %c0_8 = arith.constant 0 : index
    %c0_9 = arith.constant 0 : index
    %14 = vector.load %arg4[%c0_8, %c0_9] : memref<64x32xf32, #tpu.memory_space<vmem>>, vector<64x32xf32>
    %cst_10 = arith.constant dense<0.000000e+00> : vector<8x32xf32>
    %15 = tpu.matmul %13, %14, %cst_10 {dimension_numbers = #tpu.dot_dimension_numbers<[1], [0], [0], [1], [0, 0, 1, 1], [], []>} : vector<8x64xf32>, vector<64x32xf32>, vector<8x32xf32> -> vector<8x32xf32>
    %c0_11 = arith.constant 0 : index
    %c0_12 = arith.constant 0 : index
    %16 = vector.load %arg5[%c0_11, %c0_12] : memref<1x32xf32, #tpu.memory_space<vmem>>, vector<1x32xf32>
    %17 = vector.broadcast %16 : vector<1x32xf32> to vector<8x32xf32>
    %18 = arith.addf %15, %17 : vector<8x32xf32>
    %c0_13 = arith.constant 0 : index
    %c0_14 = arith.constant 0 : index
    %19 = vector.load %arg6[%c0_13, %c0_14] : memref<1x32xf32, #tpu.memory_space<vmem>>, vector<1x32xf32>
    %c0_15 = arith.constant 0 : index
    %c0_16 = arith.constant 0 : index
    %20 = vector.load %arg7[%c0_15, %c0_16] : memref<1x32xf32, #tpu.memory_space<vmem>>, vector<1x32xf32>
    %cst_17 = arith.constant dense<0.000000e+00> : vector<8xf32>
    %21 = vector.multi_reduction <add>, %18, %cst_17 [1] : vector<8x32xf32> to vector<8xf32>
    %22 = vector.shape_cast %21 : vector<8xf32> to vector<8x1xf32>
    %cst_18 = arith.constant 3.200000e+01 : f32
    %23 = vector.broadcast %cst_18 : f32 to vector<8x1xf32>
    %24 = arith.divf %22, %23 : vector<8x1xf32>
    %25 = vector.broadcast %24 : vector<8x1xf32> to vector<8x32xf32>
    %26 = arith.subf %18, %25 : vector<8x32xf32>
    %27 = vector.broadcast %24 : vector<8x1xf32> to vector<8x32xf32>
    %28 = arith.subf %18, %27 : vector<8x32xf32>
    %29 = arith.mulf %26, %28 : vector<8x32xf32>
    %cst_19 = arith.constant dense<0.000000e+00> : vector<8xf32>
    %30 = vector.multi_reduction <add>, %29, %cst_19 [1] : vector<8x32xf32> to vector<8xf32>
    %31 = vector.shape_cast %30 : vector<8xf32> to vector<8x1xf32>
    %cst_20 = arith.constant 3.200000e+01 : f32
    %32 = vector.broadcast %cst_20 : f32 to vector<8x1xf32>
    %33 = arith.divf %31, %32 : vector<8x1xf32>
    %34 = vector.broadcast %24 : vector<8x1xf32> to vector<8x32xf32>
    %35 = arith.subf %18, %34 : vector<8x32xf32>
    %cst_21 = arith.constant 9.99999997E-7 : f32
    %36 = vector.broadcast %cst_21 : f32 to vector<8x1xf32>
    %37 = arith.addf %33, %36 : vector<8x1xf32>
    %38 = math.rsqrt %37 : vector<8x1xf32>
    %39 = vector.broadcast %38 : vector<8x1xf32> to vector<8x32xf32>
    %40 = arith.mulf %35, %39 : vector<8x32xf32>
    %41 = vector.broadcast %19 : vector<1x32xf32> to vector<8x32xf32>
    %42 = arith.mulf %40, %41 : vector<8x32xf32>
    %43 = vector.broadcast %20 : vector<1x32xf32> to vector<8x32xf32>
    %44 = arith.addf %42, %43 : vector<8x32xf32>
    %c0_22 = arith.constant 0 : index
    %c0_23 = arith.constant 0 : index
    %45 = vector.load %arg8[%c0_22, %c0_23] : memref<8x32xf32, #tpu.memory_space<vmem>>, vector<8x32xf32>
    tpu.vector_store %arg8[%c0_22, %c0_23], %44 {strides = array<i32>} : memref<8x32xf32, #tpu.memory_space<vmem>>, vector<8x32xf32>,
    return
  }
  func.func @transform_0(%arg0: i32) -> (i32, i32) {
    %c0_i32 = arith.constant 0 : i32
    %c0_i32_0 = arith.constant 0 : i32
    return %arg0, %c0_i32 : i32, i32
  }
  func.func @transform_1(%arg0: i32) -> (i32, i32) {
    %c0_i32 = arith.constant 0 : i32
    %c0_i32_0 = arith.constant 0 : i32
    %c0_i32_1 = arith.constant 0 : i32
    return %c0_i32, %c0_i32_0 : i32, i32
  }
  func.func @transform_2(%arg0: i32) -> (i32, i32) {
    %c0_i32 = arith.constant 0 : i32
    %c0_i32_0 = arith.constant 0 : i32
    %c0_i32_1 = arith.constant 0 : i32
    return %c0_i32, %c0_i32_0 : i32, i32
  }
  func.func @transform_3(%arg0: i32) -> (i32, i32) {
    %c0_i32 = arith.constant 0 : i32
    %c0_i32_0 = arith.constant 0 : i32
    %c0_i32_1 = arith.constant 0 : i32
    return %c0_i32, %c0_i32_0 : i32, i32
  }
  func.func @transform_4(%arg0: i32) -> (i32, i32) {
    %c0_i32 = arith.constant 0 : i32
    %c0_i32_0 = arith.constant 0 : i32
    %c0_i32_1 = arith.constant 0 : i32
    return %c0_i32, %c0_i32_0 : i32, i32
  }
  func.func @transform_5(%arg0: i32) -> (i32, i32) {
    %c0_i32 = arith.constant 0 : i32
    %c0_i32_0 = arith.constant 0 : i32
    %c0_i32_1 = arith.constant 0 : i32
    return %c0_i32, %c0_i32_0 : i32, i32
  }
  func.func @transform_6(%arg0: i32) -> (i32, i32) {
    %c0_i32 = arith.constant 0 : i32
    %c0_i32_0 = arith.constant 0 : i32
    %c0_i32_1 = arith.constant 0 : i32
    return %c0_i32, %c0_i32_0 : i32, i32
  }
  func.func @transform_7(%arg0: i32) -> (i32, i32) {
    %c0_i32 = arith.constant 0 : i32
    %c0_i32_0 = arith.constant 0 : i32
    return %arg0, %c0_i32 : i32, i32
  }
}

module attributes {stable_mosaic.version = 11 : i64} {
  func.func @_mlp_kernel_single(%arg0: i32, %arg1: memref<8x32xf32, #tpu.memory_space<vmem>>, %arg2: memref<32x64xf32, #tpu.memory_space<vmem>>, %arg3: memref<1x64xf32, #tpu.memory_space<vmem>>, %arg4: memref<64x32xf32, #tpu.memory_space<vmem>>, %arg5: memref<1x32xf32, #tpu.memory_space<vmem>>, %arg6: memref<1x32xf32, #tpu.memory_space<vmem>>, %arg7: memref<1x32xf32, #tpu.memory_space<vmem>>, %arg8: memref<8x32xf32, #tpu.memory_space<vmem>>) attributes {dimension_semantics = [#tpu.dimension_semantics<parallel>], iteration_bounds = array<i64: 2>, scalar_prefetch = 0 : i64, scratch_operands = 0 : i64, tpu.core_type = #tpu.core_type<tc>, window_params = [{transform_indices = @transform_0, window_bounds = array<i64: 8, 32>}, {pipeline_mode = #tpu.pipeline_mode<synchronous>, transform_indices = @transform_1, window_bounds = array<i64: 32, 64>}, {pipeline_mode = #tpu.pipeline_mode<synchronous>, transform_indices = @transform_2, window_bounds = array<i64: 1, 64>}, {pipeline_mode = #tpu.pipeline_mode<synchronous>, transform_indices = @transform_3, window_bounds = array<i64: 64, 32>}, {pipeline_mode = #tpu.pipeline_mode<synchronous>, transform_indices = @transform_4, window_bounds = array<i64: 1, 32>}, {pipeline_mode = #tpu.pipeline_mode<synchronous>, transform_indices = @transform_5, window_bounds = array<i64: 1, 32>}, {pipeline_mode = #tpu.pipeline_mode<synchronous>, transform_indices = @transform_6, window_bounds = array<i64: 1, 32>}, {transform_indices = @transform_7, window_bounds = array<i64: 8, 32>}]} {
    %c0 = arith.constant 0 : index
    %c0_0 = arith.constant 0 : index
    %0 = vector.load %arg1[%c0, %c0_0] : memref<8x32xf32, #tpu.memory_space<vmem>>, vector<8x32xf32>
    %c0_1 = arith.constant 0 : index
    %c0_2 = arith.constant 0 : index
    %1 = vector.load %arg2[%c0_1, %c0_2] : memref<32x64xf32, #tpu.memory_space<vmem>>, vector<32x64xf32>
    %cst = arith.constant dense<0.000000e+00> : vector<8x64xf32>
    %2 = tpu.matmul %0, %1, %cst {dimension_numbers = #tpu.dot_dimension_numbers<[1], [0], [0], [1], [0, 0, 1, 1], [], []>} : vector<8x32xf32>, vector<32x64xf32>, vector<8x64xf32> -> vector<8x64xf32>
    %c0_3 = arith.constant 0 : index
    %c0_4 = arith.constant 0 : index
    %3 = vector.load %arg3[%c0_3, %c0_4] : memref<1x64xf32, #tpu.memory_space<vmem>>, vector<1x64xf32>
    %4 = vector.broadcast %3 : vector<1x64xf32> to vector<8x64xf32>
    %5 = arith.addf %2, %4 : vector<8x64xf32>
    %cst_5 = arith.constant 5.000000e-01 : f32
    %6 = vector.broadcast %cst_5 : f32 to vector<8x64xf32>
    %7 = arith.mulf %6, %5 : vector<8x64xf32>
    %cst_6 = arith.constant 0.707106769 : f32
    %8 = vector.broadcast %cst_6 : f32 to vector<8x64xf32>
    %9 = arith.mulf %5, %8 : vector<8x64xf32>
    %10 = math.erf %9 : vector<8x64xf32>
    %cst_7 = arith.constant 1.000000e+00 : f32
    %11 = vector.broadcast %cst_7 : f32 to vector<8x64xf32>
    %12 = arith.addf %11, %10 : vector<8x64xf32>
    %13 = arith.mulf %7, %12 : vector<8x64xf32>
    %c0_8 = arith.constant 0 : index
    %c0_9 = arith.constant 0 : index
    %14 = vector.load %arg4[%c0_8, %c0_9] : memref<64x32xf32, #tpu.memory_space<vmem>>, vector<64x32xf32>
    %cst_10 = arith.constant dense<0.000000e+00> : vector<8x32xf32>
    %15 = tpu.matmul %13, %14, %cst_10 {dimension_numbers = #tpu.dot_dimension_numbers<[1], [0], [0], [1], [0, 0, 1, 1], [], []>} : vector<8x64xf32>, vector<64x32xf32>, vector<8x32xf32> -> vector<8x32xf32>
    %c0_11 = arith.constant 0 : index
    %c0_12 = arith.constant 0 : index
    %16 = vector.load %arg5[%c0_11, %c0_12] : memref<1x32xf32, #tpu.memory_space<vmem>>, vector<1x32xf32>
    %17 = vector.broadcast %16 : vector<1x32xf32> to vector<8x32xf32>
    %18 = arith.addf %15, %17 : vector<8x32xf32>
    %c0_13 = arith.constant 0 : index
    %c0_14 = arith.constant 0 : index
    %19 = vector.load %arg6[%c0_13, %c0_14] : memref<1x32xf32, #tpu.memory_space<vmem>>, vector<1x32xf32>
    %c0_15 = arith.constant 0 : index
    %c0_16 = arith.constant 0 : index
    %20 = vector.load %arg7[%c0_15, %c0_16] : memref<1x32xf32, #tpu.memory_space<vmem>>, vector<1x32xf32>
    %cst_17 = arith.constant dense<0.000000e+00> : vector<8xf32>
    %21 = vector.multi_reduction <add>, %18, %cst_17 [1] : vector<8x32xf32> to vector<8xf32>
    %22 = vector.shape_cast %21 : vector<8xf32> to vector<8x1xf32>
    %cst_18 = arith.constant 3.200000e+01 : f32
    %23 = vector.broadcast %cst_18 : f32 to vector<8x1xf32>
    %24 = arith.divf %22, %23 : vector<8x1xf32>
    %25 = vector.broadcast %24 : vector<8x1xf32> to vector<8x32xf32>
    %26 = arith.subf %18, %25 : vector<8x32xf32>
    %27 = vector.broadcast %24 : vector<8x1xf32> to vector<8x32xf32>
    %28 = arith.subf %18, %27 : vector<8x32xf32>
    %29 = arith.mulf %26, %28 : vector<8x32xf32>
    %cst_19 = arith.constant dense<0.000000e+00> : vector<8xf32>
    %30 = vector.multi_reduction <add>, %29, %cst_19 [1] : vector<8x32xf32> to vector<8xf32>
    %31 = vector.shape_cast %30 : vector<8xf32> to vector<8x1xf32>
    %cst_20 = arith.constant 3.200000e+01 : f32
    %32 = vector.broadcast %cst_20 : f32 to vector<8x1xf32>
    %33 = arith.divf %31, %32 : vector<8x1xf32>
    %34 = vector.broadcast %24 : vector<8x1xf32> to vector<8x32xf32>
    %35 = arith.subf %18, %34 : vector<8x32xf32>
    %cst_21 = arith.constant 9.99999997E-7 : f32
    %36 = vector.broadcast %cst_21 : f32 to vector<8x1xf32>
    %37 = arith.addf %33, %36 : vector<8x1xf32>
    %38 = math.rsqrt %37 : vector<8x1xf32>
    %39 = vector.broadcast %38 : vector<8x1xf32> to vector<8x32xf32>
    %40 = arith.mulf %35, %39 : vector<8x32xf32>
    %41 = vector.broadcast %19 : vector<1x32xf32> to vector<8x32xf32>
    %42 = arith.mulf %40, %41 : vector<8x32xf32>
    %43 = vector.broadcast %20 : vector<1x32xf32> to vector<8x32xf32>
    %44 = arith.addf %42, %43 : vector<8x32xf32>
    %c0_22 = arith.constant 0 : index
    %c0_23 = arith.constant 0 : index
    %45 = vector.load %arg8[%c0_22, %c0_23] : memref<8x32xf32, #tpu.memory_space<vmem>>, vector<8x32xf32>
    tpu.vector_store %arg8[%c0_22, %c0_23], %44 {strides = array<i32>} : memref<8x32xf32, #tpu.memory_space<vmem>>, vector<8x32xf32>,
    return
  }
  func.func @transform_0(%arg0: i32) -> (i32, i32) {
    %c0_i32 = arith.constant 0 : i32
    %c0_i32_0 = arith.constant 0 : i32
    return %arg0, %c0_i32 : i32, i32
  }
  func.func @transform_1(%arg0: i32) -> (i32, i32) {
    %c0_i32 = arith.constant 0 : i32
    %c0_i32_0 = arith.constant 0 : i32
    %c0_i32_1 = arith.constant 0 : i32
    return %c0_i32, %c0_i32_0 : i32, i32
  }
  func.func @transform_2(%arg0: i32) -> (i32, i32) {
    %c0_i32 = arith.constant 0 : i32
    %c0_i32_0 = arith.constant 0 : i32
    %c0_i32_1 = arith.constant 0 : i32
    return %c0_i32, %c0_i32_0 : i32, i32
  }
  func.func @transform_3(%arg0: i32) -> (i32, i32) {
    %c0_i32 = arith.constant 0 : i32
    %c0_i32_0 = arith.constant 0 : i32
    %c0_i32_1 = arith.constant 0 : i32
    return %c0_i32, %c0_i32_0 : i32, i32
  }
  func.func @transform_4(%arg0: i32) -> (i32, i32) {
    %c0_i32 = arith.constant 0 : i32
    %c0_i32_0 = arith.constant 0 : i32
    %c0_i32_1 = arith.constant 0 : i32
    return %c0_i32, %c0_i32_0 : i32, i32
  }
  func.func @transform_5(%arg0: i32) -> (i32, i32) {
    %c0_i32 = arith.constant 0 : i32
    %c0_i32_0 = arith.constant 0 : i32
    %c0_i32_1 = arith.constant 0 : i32
    return %c0_i32, %c0_i32_0 : i32, i32
  }
  func.func @transform_6(%arg0: i32) -> (i32, i32) {
    %c0_i32 = arith.constant 0 : i32
    %c0_i32_0 = arith.constant 0 : i32
    %c0_i32_1 = arith.constant 0 : i32
    return %c0_i32, %c0_i32_0 : i32, i32
  }
  func.func @transform_7(%arg0: i32) -> (i32, i32) {
    %c0_i32 = arith.constant 0 : i32
    %c0_i32_0 = arith.constant 0 : i32
    return %arg0, %c0_i32 : i32, i32
  }
}

</mosaic_0001>

<bundles_post_ra>
// kernel: tpu_custom_call.1
= control target key start
LH: loop header
LB: loop body
LE: loop exit
PB: predicated region body
PF: predicated region fallthrough
CT: control target
= control target key end

     0   :  { %12 = vsyncpa [#allocation3], 0  ;;  %s807_s0 = inlined_call_operand.vmem [shape: f32[16,32], index: 0, kind: input, shape index: {}]   ;;  %s808_s1 = inlined_call_operand.vmem [shape: f32[32,64], index: 1, kind: input, shape index: {}]   ;;  %s809_s2 = inlined_call_operand.vmem [shape: f32[1,64], index: 2, kind: input, shape index: {}]   ;;  %s810_s3 = inlined_call_operand.vmem [shape: f32[64,32], index: 3, kind: input, shape index: {}]   ;;  %s811_s4 = inlined_call_operand.vmem [shape: f32[1,32], index: 4, kind: input, shape index: {}]   ;;  %s812_s5 = inlined_call_operand.vmem [shape: f32[1,32], index: 5, kind: input, shape index: {}]   ;;  %s813_s6 = inlined_call_operand.vmem [shape: f32[1,32], index: 6, kind: input, shape index: {}]   ;;  %s814_s7 = inlined_call_operand.hbm [shape: f32[16,32], index: 7, kind: output, shape index: {}]  }
   0x1   :  { %14 = vsyncpa [#allocation3 + $0x1], 0  ;;  %s670_s24 = smov 0   ;;  %s672_s25 = smov 0  }
   0x2   :  { %s674_s26 = smov 0   ;;  %s676_s27 = smov 0  }
   0x3 LB: > { %s691_s28 = sadd.s32 4294967295, %s627_s27   ;;  %s502_s29 = sadd.s32 4294967294, %s627_s27   ;;  %s627_s27 = sphi %s676_s27, %s820_s27   ;;  %s623_s26 = sphi %s674_s26, %s819_s26   ;;  %s619_s25 = sphi %s672_s25, %s818_s25   ;;  %s615_s24 = sphi %s670_s24, %s817_s24  }
   0x4   : > { %s695_s30 = sadd.s32 1, %s627_s27   ;;  %s179_s8 = sadd.s32 1, %s623_s26 }
   0x5   : > { %s176_s9 = ssub.s32 %s627_s27, %s695_s30  ;;  %p189_p0 = scmp.ne.s32.totalorder %s623_s26, %s619_s25 }
   0x6   : > { %p177_p1 = scmp.eq.s32.totalorder %s176_s9, 0  ;;  %p190_p2 = scmp.eq.s32.totalorder %s691_s28, 1 }
   0x7   : > { %p195_p3 = scmp.ne.s32.totalorder %s619_s25, %s615_s24  ;;  %p196_p4 = scmp.eq.s32.totalorder %s502_s29, 1 }
   0x8   : > { %s706_s10 = scalar_select %p177_p1, %s623_s26, %s179_s8  }
   0x9   : > { %p708_p5 = por %p190_p2, %p189_p0  ;;  %p712_p6 = por %p196_p4, %p195_p3 }
   0xa   : > { %p505_p7 = scmp.ge.s32.totalorder %s627_s27, 1  ;;  %p239_p8 = scmp.lt.s32.totalorder %s627_s27, 3 }
   0xc   : > { %p240_p9 = pnand %p505_p7, %p239_p8 }
   0xd   : > { %p270_p10 = scmp.lt.s32.totalorder (!%p240_p9), %s691_s28, 1  ;;  %s267_s18 = sand.u32 (!%p240_p9), 1, %s619_s25  }
   0xe   : > { %243 = sbr.rel (%p240_p9) target bundleno = 605 (0x25d), region = 48  ;;  %s512_s20 = sshll.u32 (!%p240_p9), %s691_s28, 3 }
   0xf   : > { %s428_s16 = scalar_lea.sflag (!%p240_p9), [#allocation3], %s267_s18 }
  0x13   : > { %v278_v0 = vld [vmem:[%s808_s1 + $0x18] sm:$0xff]  ;;  %v277_v1 = vld [vmem:[%s808_s1 + $0x10] sm:$0xff]  ;;  %v276_v2 = vld [vmem:[%s808_s1 + $0x8] sm:$0xff]  ;;  %s271_s19 = scalar_select %p270_p10, %s691_s28, 1  ;;  %vm283_vm0 = vcmask 261120   ;;  %vm363_vm5 = vcmask 523264  }
  0x14   : > { %299 = vmatpush.msra.mxu0 %v278_v0  ;;  %v275_v3 = vld [vmem:[%s808_s1] sm:$0xff]  ;;  %v358_v11 = vld [vmem:[%s810_s3 + $0x38] sm:$0xff]  ;;  %v357_v14 = vld [vmem:[%s810_s3 + $0x30] sm:$0xff]  ;;  %v629_v59 = vmov 32.0  }
  0x15   : > { %s507_s22 = sshll.u32 %s271_s19, 3  ;;  %v555_v5 = vld [vmem:[%s809_s2] ss:$0 sm:$0xff]  ;;  %375 = vmatpush.msra.mxu1 %v358_v11  ;;  %v356_v17 = vld [vmem:[%s810_s3 + $0x28] sm:$0xff]  ;;  %v354_v21 = vld [vmem:[%s810_s3 + $0x18] sm:$0xff]  ;;  %s506_s19 = sshll.u32 %s267_s18, 3 }
  0x16   : > { %300 = vmatpush.msra.mxu0 %v277_v1  ;;  %s273_s8 = scalar_lea.vmem %s807_s0, %s507_s22  ;;  %v355_v20 = vld [vmem:[%s810_s3 + $0x20] sm:$0xff]  ;;  %v353_v23 = vld [vmem:[%s810_s3 + $0x10] sm:$0xff]  ;;  %v352_v26 = vld [vmem:[%s810_s3 + $0x8] sm:$0xff]  ;;  %s269_s14 = scalar_lea.vmem [#allocation2], %s506_s19 }
  0x17   : > { %v274_v4 = vld [vmem:[%s273_s8] sm:$0xff]  ;;  %376 = vmatpush.msra.mxu1 %v357_v14  ;;  %s438_s8 = scalar_lea.hbm %s814_s7, %s512_s20  ;;  %s440_s28 = sshll.u32 %s269_s14, 4  ;;  %s441_s28 = int_to_ptr.vmem [resolvable:$true] %s440_s28 }
  0x18   : > { %301 = vmatpush.msra.mxu0 %v276_v2  ;;  %v351_v28 = vld [vmem:[%s810_s3] sm:$0xff]  ;;  %s442_s15 = sshll.u32 %s438_s8, 4  ;;  %s585_s19 = scalar_lea.hbm %s814_s7, 16  ;;  %s443_s15 = int_to_ptr.hbm [resolvable:$true] %s442_s15 }
  0x19   : > { %377 = vmatpush.msra.mxu1 %v356_v17  ;;  %v556_v55 = vld [vmem:[%s811_s4] ss:$0 sm:$0xff]  ;;  %s579_s17 = sshra.s32 %s443_s15, 4  ;;  %s580_s17 = int_to_ptr.hbm [resolvable:$true] %s579_s17 }
  0x1a   : > { %302 = vmatpush.msra.mxu0 %v275_v3  ;;  %s581_s20 = scalar_lea.hbm %s580_s17, 8  ;;  %p586_p0 = scmp.lt.s32.totalorder %s580_s17, %s814_s7 }
  0x1b   : > { %508 = vmatmul.msk.f32.vlgmr.msra.gmra.mxu0 %vm283_vm0, %v274_v4  ;;  %378 = vmatpush.msra.mxu1 %v355_v20  ;;  %p582_p11 = scmp.ne.s32.totalorder %s580_s17, %s581_s20  ;;  %p587_p1 = scmp.lt.s32.totalorder %s585_s19, %s581_s20 }
  0x1d   : > { %379 = vmatpush.msra.mxu1 %v354_v21  ;;  %p583_p12 = pnand %p582_p11, %p708_p5  ;;  %p588_p2 = por %p587_p1, %p586_p0 }
  0x1f   : > { %380 = vmatpush.msra.mxu1 %v353_v23  ;;  %p584_p13 = pneg %p583_p12 }
  0x21   : > { %381 = vmatpush.msra.mxu1 %v352_v26  ;;  %p589_p3 = pnand %p588_p2, %p584_p13 }
  0x23   : > { %382 = vmatpush.msra.mxu1 %v351_v28 }
  0x98   : > { %v304_v6 = vpop.f32.mrf.mxu0 }
  0x99   : > { %v305_v7 = vadd.f32 %v555_v5, %v304_v6 }
  0x9b   : > { %v308_v8 = vmul.f32 0.70710677, %v305_v7  ;;  %v307_v52 = vmul.f32 0.5, %v305_v7 }
  0x9d   : > { %v309_v9 = vmul.f32 %v308_v8, %v308_v8 }
  0x9f   : > { %v310_v10 = vmin.f32 %v309_v9, 16.0 }
  0xa1   : > { %v311_v12 = vmul.f32 2.1237322e-06, %v310_v10  ;;  %v322_v13 = vmul.f32 3.8918573e-05, %v310_v10 }
  0xa3   : > { %v312_v15 = vadd.f32 0.00028619796, %v311_v12  ;;  %v323_v16 = vadd.f32 0.001143296, %v322_v13 }
  0xa5   : > { %v313_v18 = vmul.f32 %v312_v15, %v310_v10  ;;  %v324_v19 = vmul.f32 %v323_v16, %v310_v10  ;;  %v557_v16 = vld [vmem:[%s812_s5] ss:$0 sm:$0xff] }
  0xa7   : > { %v325_v22 = vadd.f32 0.014752088, %v324_v19  ;;  %v314_v24 = vadd.f32 0.0036580483, %v313_v18  ;;  %v558_v19 = vld [vmem:[%s813_s6] ss:$0 sm:$0xff] }
  0xa9   : > { %v326_v25 = vmul.f32 %v325_v22, %v310_v10  ;;  %v315_v29 = vmul.f32 %v314_v24, %v310_v10 }
  0xab   : > { %v327_v27 = vadd.f32 0.112945676, %v326_v25  ;;  %v316_v32 = vadd.f32 0.05243302, %v315_v29 }
  0xad   : > { %v328_v30 = vmul.f32 %v327_v27, %v310_v10  ;;  %v317_v35 = vmul.f32 %v316_v32, %v310_v10 }
  0xaf   : > { %v329_v31 = vadd.f32 0.4994258, %v328_v30  ;;  %v318_v36 = vadd.f32 0.18741608, %v317_v35 }
  0xb1   : > { %v330_v33 = vmul.f32 %v329_v31, %v310_v10  ;;  %v319_v38 = vmul.f32 %v318_v36, %v310_v10 }
  0xb3   : > { %v331_v34 = vadd.f32 1.0, %v330_v33  ;;  %v320_v42 = vadd.f32 1.1283791, %v319_v38 }
  0xb5   : > { %559 = vrcp.f32 %v331_v34  ;;  %v343_v41 = vand.u32 2147483648, %v331_v34  ;;  %v341_v44 = vand.u32 2147483647, %v331_v34  ;;  %vm337_vm2 = vweird.f32 %v331_v34 }
  0xb6   : > { %v321_v47 = vmul.f32 %v320_v42, %v308_v8  ;;  %561 = vrcp.f32 %v629_v59 }
  0xb7   : > { %v344_v46 = vor.u32 1.1754944e-38, %v343_v41  ;;  %vm342_vm4 = vcmp.eq.f32.partialorder %v341_v44, 8.507059e+37 }
  0xbb   : > { %v560_v37 = vpop.eup %559 }
  0xbc   : > { %v333_v39 = vmul.f32 %v560_v37, %v331_v34  ;;  %vm338_vm1 = vweird.f32 %v560_v37  ;;  %v562_v60 = vpop.eup %561 }
  0xbd   : > { %vm339_vm3 = vmor %vm337_vm2, %vm338_vm1  ;;  %v393_v61 = vmul.f32 32.0, %v562_v60  ;;  %vm397_vm6 = vweird.f32 %v562_v60 }
  0xbe   : > { %v334_v40 = vsub.f32 1.0, %v333_v39 }
  0xbf   : > { %v394_v62 = vsub.f32 1.0, %v393_v61 }
  0xc0   : > { %v335_v43 = vmul.f32 %v560_v37, %v334_v40 }
  0xc1   : > { %v395_v63 = vmul.f32 %v562_v60, %v394_v62 }
  0xc2   : > { %v336_v45 = vadd.f32 %v560_v37, %v335_v43 }
  0xc3   : > { %v396_v0 = vadd.f32 %v562_v60, %v395_v63 }
  0xc4   : > { %v340_v48 = vsel %vm339_vm3, %v560_v37, %v336_v45 }
  0xc5   : > { %v345_v49 = vsel %vm342_vm4, %v344_v46, %v340_v48  ;;  %v398_v1 = vsel %vm397_vm6, %v562_v60, %v396_v0 }
  0xc6   : > { %v346_v50 = vmul.f32 %v345_v49, %v321_v47 }
  0xc8   : > { %v509_v51 = vclamps-f32 %v346_v50, 1.0 }
  0xca   : > { %v349_v53 = vadd.f32 1.0, %v509_v51 }
  0xcc   : > { %v350_v54 = vmul.f32 %v349_v53, %v307_v52 }
  0xce   : > { %510 = vmatmul.msk.f32.vlgmr.msra.gmra.mxu1 %vm363_vm5, %v350_v54 }
 0x14b   : > { %v384_v56 = vpop.f32.mrf.mxu1 }
 0x14c   : > { %v385_v57 = vadd.f32 %v556_v55, %v384_v56 }
 0x14e   : > { %v389_v58 = vsel %vm283_vm0, %v385_v57, 0.0 }
 0x14f   : > { %390 = vadd.xlane.f32.xlu0 %v389_v58 }
 0x1c2   : > { %v391_v2 = vpop.xlane.xlu0 %390 }
 0x1c3   : > { %v399_v3 = vmul.f32 %v398_v1, %v391_v2 }
 0x1c5   : > { %v400_v4 = vsub.f32 %v385_v57, %v399_v3 }
 0x1c7   : > { %v401_v5 = vmul.f32 %v400_v4, %v400_v4 }
 0x1c9   : > { %v402_v6 = vsel %vm283_vm0, %v401_v5, 0.0 }
 0x1ca   : > { %403 = vadd.xlane.f32.xlu0 %v402_v6 }
 0x23d   : > { %v404_v7 = vpop.xlane.xlu0 %403 }
 0x23e   : > { %v405_v8 = vmul.f32 %v404_v7, %v398_v1 }
 0x240   : > { %v406_v9 = vadd.f32 1e-06, %v405_v8 }
 0x242   : > { %563 = vrsqrt.f32 %v406_v9  ;;  %vm413_vm8 = vweird.f32 %v406_v9 }
 0x248   : > { %v564_v10 = vpop.eup %563 }
 0x249   : > { %v408_v11 = vmul.f32 %v564_v10, %v406_v9  ;;  %vm414_vm7 = vweird.f32 %v564_v10 }
 0x24a   : > { %vm415_vm9 = vmor %vm413_vm8, %vm414_vm7 }
 0x24b   : > { %v409_v12 = vmul.f32 %v564_v10, %v408_v11 }
 0x24d   : > { %v410_v13 = vmul.f32 0.5, %v409_v12 }
 0x24f   : > { %v411_v14 = vsub.f32 1.5, %v410_v13 }
 0x251   : > { %v412_v15 = vmul.f32 %v564_v10, %v411_v14 }
 0x253   : > { %v416_v17 = vsel %vm415_vm9, %v564_v10, %v412_v15 }
 0x254   : > { %v417_v18 = vmul.f32 %v416_v17, %v400_v4 }
 0x256   : > { %v421_v20 = vmul.f32 %v557_v16, %v417_v18 }
 0x258   : > { %v425_v21 = vadd.f32 %v558_v19, %v421_v20 }
 0x25a   : > { %426 = vst.msk [vmem:[%s269_s14] sm:$0xff] %vm283_vm0, %v425_v21 }
 0x25b   : > { %592 = shalt.err (!%p589_p3)
}
 0x25c   : > { %515 = dma.vmem_to_hbm [thread:$0]  (%p708_p5), %s441_s28, 128, %s443_s15, %s428_s16  }
 0x25d PF: > { %p521_p4 = scmp.ge.s32.totalorder %s627_s27, 2  ;;  %s454_s18 = sand.u32 1, %s615_s24  }
 0x25e   : > { %s455_s8 = scalar_lea.sflag [#allocation3], %s454_s18 }
 0x25f   : > { %p518_p7 = pnand %p521_p4, %p712_p6 }
 0x261   : > { %p519_p8 = pneg %p518_p7 }
 0x263   : > { %610 = dma.done.wait (%p519_p8), %s455_s8, 128  }
 0x264   : > { %612 = vsyncadd (%p519_p8), %s455_s8, 4294967168  ;;  %p17_p9 = scmp.ge.s32.totalorder %s695_s30, 4   ;;  %s817_s24 = smov %s619_s25 }
 0x265   : > { %s818_s25 = smov %s623_s26  ;;  %s819_s26 = smov %s706_s10 }
 0x266   : > { %s820_s27 = smov %s695_s30  ;;  %19 = sbr.rel (!%p17_p9) target bundleno = 3 (0x3), region = 83 }
 0x26b   :  { %461 = vsyncpa [#allocation3], 1 }
 0x26c   :  { %463 = vsyncpa [#allocation3 + $0x1], 1 }

// kernel: tpu_custom_call.1
= control target key start
LH: loop header
LB: loop body
LE: loop exit
PB: predicated region body
PF: predicated region fallthrough
CT: control target
= control target key end

     0   :  { %12 = vsyncpa [#allocation3], 0  ;;  %s807_s0 = inlined_call_operand.vmem [shape: f32[16,32], index: 0, kind: input, shape index: {}]   ;;  %s808_s1 = inlined_call_operand.vmem [shape: f32[32,64], index: 1, kind: input, shape index: {}]   ;;  %s809_s2 = inlined_call_operand.vmem [shape: f32[1,64], index: 2, kind: input, shape index: {}]   ;;  %s810_s3 = inlined_call_operand.vmem [shape: f32[64,32], index: 3, kind: input, shape index: {}]   ;;  %s811_s4 = inlined_call_operand.vmem [shape: f32[1,32], index: 4, kind: input, shape index: {}]   ;;  %s812_s5 = inlined_call_operand.vmem [shape: f32[1,32], index: 5, kind: input, shape index: {}]   ;;  %s813_s6 = inlined_call_operand.vmem [shape: f32[1,32], index: 6, kind: input, shape index: {}]   ;;  %s814_s7 = inlined_call_operand.hbm [shape: f32[16,32], index: 7, kind: output, shape index: {}]  }
   0x1   :  { %14 = vsyncpa [#allocation3 + $0x1], 0  ;;  %s670_s24 = smov 0   ;;  %s672_s25 = smov 0  }
   0x2   :  { %s674_s26 = smov 0   ;;  %s676_s27 = smov 0  }
   0x3 LB: > { %s691_s28 = sadd.s32 4294967295, %s627_s27   ;;  %s502_s29 = sadd.s32 4294967294, %s627_s27   ;;  %s627_s27 = sphi %s676_s27, %s820_s27   ;;  %s623_s26 = sphi %s674_s26, %s819_s26   ;;  %s619_s25 = sphi %s672_s25, %s818_s25   ;;  %s615_s24 = sphi %s670_s24, %s817_s24  }
   0x4   : > { %s695_s30 = sadd.s32 1, %s627_s27   ;;  %s179_s8 = sadd.s32 1, %s623_s26 }
   0x5   : > { %s176_s9 = ssub.s32 %s627_s27, %s695_s30  ;;  %p189_p0 = scmp.ne.s32.totalorder %s623_s26, %s619_s25 }
   0x6   : > { %p177_p1 = scmp.eq.s32.totalorder %s176_s9, 0  ;;  %p190_p2 = scmp.eq.s32.totalorder %s691_s28, 1 }
   0x7   : > { %p195_p3 = scmp.ne.s32.totalorder %s619_s25, %s615_s24  ;;  %p196_p4 = scmp.eq.s32.totalorder %s502_s29, 1 }
   0x8   : > { %s706_s10 = scalar_select %p177_p1, %s623_s26, %s179_s8  }
   0x9   : > { %p708_p5 = por %p190_p2, %p189_p0  ;;  %p712_p6 = por %p196_p4, %p195_p3 }
   0xa   : > { %p505_p7 = scmp.ge.s32.totalorder %s627_s27, 1  ;;  %p239_p8 = scmp.lt.s32.totalorder %s627_s27, 3 }
   0xc   : > { %p240_p9 = pnand %p505_p7, %p239_p8 }
   0xd   : > { %p270_p10 = scmp.lt.s32.totalorder (!%p240_p9), %s691_s28, 1  ;;  %s267_s18 = sand.u32 (!%p240_p9), 1, %s619_s25  }
   0xe   : > { %243 = sbr.rel (%p240_p9) target bundleno = 605 (0x25d), region = 48  ;;  %s512_s20 = sshll.u32 (!%p240_p9), %s691_s28, 3 }
   0xf   : > { %s428_s16 = scalar_lea.sflag (!%p240_p9), [#allocation3], %s267_s18 }
  0x13   : > { %v278_v0 = vld [vmem:[%s808_s1 + $0x18] sm:$0xff]  ;;  %v277_v1 = vld [vmem:[%s808_s1 + $0x10] sm:$0xff]  ;;  %v276_v2 = vld [vmem:[%s808_s1 + $0x8] sm:$0xff]  ;;  %s271_s19 = scalar_select %p270_p10, %s691_s28, 1  ;;  %vm283_vm0 = vcmask 261120   ;;  %vm363_vm5 = vcmask 523264  }
  0x14   : > { %299 = vmatpush.msra.mxu0 %v278_v0  ;;  %v275_v3 = vld [vmem:[%s808_s1] sm:$0xff]  ;;  %v358_v11 = vld [vmem:[%s810_s3 + $0x38] sm:$0xff]  ;;  %v357_v14 = vld [vmem:[%s810_s3 + $0x30] sm:$0xff]  ;;  %v629_v59 = vmov 32.0  }
  0x15   : > { %s507_s22 = sshll.u32 %s271_s19, 3  ;;  %v555_v5 = vld [vmem:[%s809_s2] ss:$0 sm:$0xff]  ;;  %375 = vmatpush.msra.mxu1 %v358_v11  ;;  %v356_v17 = vld [vmem:[%s810_s3 + $0x28] sm:$0xff]  ;;  %v354_v21 = vld [vmem:[%s810_s3 + $0x18] sm:$0xff]  ;;  %s506_s19 = sshll.u32 %s267_s18, 3 }
  0x16   : > { %300 = vmatpush.msra.mxu0 %v277_v1  ;;  %s273_s8 = scalar_lea.vmem %s807_s0, %s507_s22  ;;  %v355_v20 = vld [vmem:[%s810_s3 + $0x20] sm:$0xff]  ;;  %v353_v23 = vld [vmem:[%s810_s3 + $0x10] sm:$0xff]  ;;  %v352_v26 = vld [vmem:[%s810_s3 + $0x8] sm:$0xff]  ;;  %s269_s14 = scalar_lea.vmem [#allocation2], %s506_s19 }
  0x17   : > { %v274_v4 = vld [vmem:[%s273_s8] sm:$0xff]  ;;  %376 = vmatpush.msra.mxu1 %v357_v14  ;;  %s438_s8 = scalar_lea.hbm %s814_s7, %s512_s20  ;;  %s440_s28 = sshll.u32 %s269_s14, 4  ;;  %s441_s28 = int_to_ptr.vmem [resolvable:$true] %s440_s28 }
  0x18   : > { %301 = vmatpush.msra.mxu0 %v276_v2  ;;  %v351_v28 = vld [vmem:[%s810_s3] sm:$0xff]  ;;  %s442_s15 = sshll.u32 %s438_s8, 4  ;;  %s585_s19 = scalar_lea.hbm %s814_s7, 16  ;;  %s443_s15 = int_to_ptr.hbm [resolvable:$true] %s442_s15 }
  0x19   : > { %377 = vmatpush.msra.mxu1 %v356_v17  ;;  %v556_v55 = vld [vmem:[%s811_s4] ss:$0 sm:$0xff]  ;;  %s579_s17 = sshra.s32 %s443_s15, 4  ;;  %s580_s17 = int_to_ptr.hbm [resolvable:$true] %s579_s17 }
  0x1a   : > { %302 = vmatpush.msra.mxu0 %v275_v3  ;;  %s581_s20 = scalar_lea.hbm %s580_s17, 8  ;;  %p586_p0 = scmp.lt.s32.totalorder %s580_s17, %s814_s7 }
  0x1b   : > { %508 = vmatmul.msk.f32.vlgmr.msra.gmra.mxu0 %vm283_vm0, %v274_v4  ;;  %378 = vmatpush.msra.mxu1 %v355_v20  ;;  %p582_p11 = scmp.ne.s32.totalorder %s580_s17, %s581_s20  ;;  %p587_p1 = scmp.lt.s32.totalorder %s585_s19, %s581_s20 }
  0x1d   : > { %379 = vmatpush.msra.mxu1 %v354_v21  ;;  %p583_p12 = pnand %p582_p11, %p708_p5  ;;  %p588_p2 = por %p587_p1, %p586_p0 }
  0x1f   : > { %380 = vmatpush.msra.mxu1 %v353_v23  ;;  %p584_p13 = pneg %p583_p12 }
  0x21   : > { %381 = vmatpush.msra.mxu1 %v352_v26  ;;  %p589_p3 = pnand %p588_p2, %p584_p13 }
  0x23   : > { %382 = vmatpush.msra.mxu1 %v351_v28 }
  0x98   : > { %v304_v6 = vpop.f32.mrf.mxu0 }
  0x99   : > { %v305_v7 = vadd.f32 %v555_v5, %v304_v6 }
  0x9b   : > { %v308_v8 = vmul.f32 0.70710677, %v305_v7  ;;  %v307_v52 = vmul.f32 0.5, %v305_v7 }
  0x9d   : > { %v309_v9 = vmul.f32 %v308_v8, %v308_v8 }
  0x9f   : > { %v310_v10 = vmin.f32 %v309_v9, 16.0 }
  0xa1   : > { %v311_v12 = vmul.f32 2.1237322e-06, %v310_v10  ;;  %v322_v13 = vmul.f32 3.8918573e-05, %v310_v10 }
  0xa3   : > { %v312_v15 = vadd.f32 0.00028619796, %v311_v12  ;;  %v323_v16 = vadd.f32 0.001143296, %v322_v13 }
  0xa5   : > { %v313_v18 = vmul.f32 %v312_v15, %v310_v10  ;;  %v324_v19 = vmul.f32 %v323_v16, %v310_v10  ;;  %v557_v16 = vld [vmem:[%s812_s5] ss:$0 sm:$0xff] }
  0xa7   : > { %v325_v22 = vadd.f32 0.014752088, %v324_v19  ;;  %v314_v24 = vadd.f32 0.0036580483, %v313_v18  ;;  %v558_v19 = vld [vmem:[%s813_s6] ss:$0 sm:$0xff] }
  0xa9   : > { %v326_v25 = vmul.f32 %v325_v22, %v310_v10  ;;  %v315_v29 = vmul.f32 %v314_v24, %v310_v10 }
  0xab   : > { %v327_v27 = vadd.f32 0.112945676, %v326_v25  ;;  %v316_v32 = vadd.f32 0.05243302, %v315_v29 }
  0xad   : > { %v328_v30 = vmul.f32 %v327_v27, %v310_v10  ;;  %v317_v35 = vmul.f32 %v316_v32, %v310_v10 }
  0xaf   : > { %v329_v31 = vadd.f32 0.4994258, %v328_v30  ;;  %v318_v36 = vadd.f32 0.18741608, %v317_v35 }
  0xb1   : > { %v330_v33 = vmul.f32 %v329_v31, %v310_v10  ;;  %v319_v38 = vmul.f32 %v318_v36, %v310_v10 }
  0xb3   : > { %v331_v34 = vadd.f32 1.0, %v330_v33  ;;  %v320_v42 = vadd.f32 1.1283791, %v319_v38 }
  0xb5   : > { %559 = vrcp.f32 %v331_v34  ;;  %v343_v41 = vand.u32 2147483648, %v331_v34  ;;  %v341_v44 = vand.u32 2147483647, %v331_v34  ;;  %vm337_vm2 = vweird.f32 %v331_v34 }
  0xb6   : > { %v321_v47 = vmul.f32 %v320_v42, %v308_v8  ;;  %561 = vrcp.f32 %v629_v59 }
  0xb7   : > { %v344_v46 = vor.u32 1.1754944e-38, %v343_v41  ;;  %vm342_vm4 = vcmp.eq.f32.partialorder %v341_v44, 8.507059e+37 }
  0xbb   : > { %v560_v37 = vpop.eup %559 }
  0xbc   : > { %v333_v39 = vmul.f32 %v560_v37, %v331_v34  ;;  %vm338_vm1 = vweird.f32 %v560_v37  ;;  %v562_v60 = vpop.eup %561 }
  0xbd   : > { %vm339_vm3 = vmor %vm337_vm2, %vm338_vm1  ;;  %v393_v61 = vmul.f32 32.0, %v562_v60  ;;  %vm397_vm6 = vweird.f32 %v562_v60 }
  0xbe   : > { %v334_v40 = vsub.f32 1.0, %v333_v39 }
  0xbf   : > { %v394_v62 = vsub.f32 1.0, %v393_v61 }
  0xc0   : > { %v335_v43 = vmul.f32 %v560_v37, %v334_v40 }
  0xc1   : > { %v395_v63 = vmul.f32 %v562_v60, %v394_v62 }
  0xc2   : > { %v336_v45 = vadd.f32 %v560_v37, %v335_v43 }
  0xc3   : > { %v396_v0 = vadd.f32 %v562_v60, %v395_v63 }
  0xc4   : > { %v340_v48 = vsel %vm339_vm3, %v560_v37, %v336_v45 }
  0xc5   : > { %v345_v49 = vsel %vm342_vm4, %v344_v46, %v340_v48  ;;  %v398_v1 = vsel %vm397_vm6, %v562_v60, %v396_v0 }
  0xc6   : > { %v346_v50 = vmul.f32 %v345_v49, %v321_v47 }
  0xc8   : > { %v509_v51 = vclamps-f32 %v346_v50, 1.0 }
  0xca   : > { %v349_v53 = vadd.f32 1.0, %v509_v51 }
  0xcc   : > { %v350_v54 = vmul.f32 %v349_v53, %v307_v52 }
  0xce   : > { %510 = vmatmul.msk.f32.vlgmr.msra.gmra.mxu1 %vm363_vm5, %v350_v54 }
 0x14b   : > { %v384_v56 = vpop.f32.mrf.mxu1 }
 0x14c   : > { %v385_v57 = vadd.f32 %v556_v55, %v384_v56 }
 0x14e   : > { %v389_v58 = vsel %vm283_vm0, %v385_v57, 0.0 }
 0x14f   : > { %390 = vadd.xlane.f32.xlu0 %v389_v58 }
 0x1c2   : > { %v391_v2 = vpop.xlane.xlu0 %390 }
 0x1c3   : > { %v399_v3 = vmul.f32 %v398_v1, %v391_v2 }
 0x1c5   : > { %v400_v4 = vsub.f32 %v385_v57, %v399_v3 }
 0x1c7   : > { %v401_v5 = vmul.f32 %v400_v4, %v400_v4 }
 0x1c9   : > { %v402_v6 = vsel %vm283_vm0, %v401_v5, 0.0 }
 0x1ca   : > { %403 = vadd.xlane.f32.xlu0 %v402_v6 }
 0x23d   : > { %v404_v7 = vpop.xlane.xlu0 %403 }
 0x23e   : > { %v405_v8 = vmul.f32 %v404_v7, %v398_v1 }
 0x240   : > { %v406_v9 = vadd.f32 1e-06, %v405_v8 }
 0x242   : > { %563 = vrsqrt.f32 %v406_v9  ;;  %vm413_vm8 = vweird.f32 %v406_v9 }
 0x248   : > { %v564_v10 = vpop.eup %563 }
 0x249   : > { %v408_v11 = vmul.f32 %v564_v10, %v406_v9  ;;  %vm414_vm7 = vweird.f32 %v564_v10 }
 0x24a   : > { %vm415_vm9 = vmor %vm413_vm8, %vm414_vm7 }
 0x24b   : > { %v409_v12 = vmul.f32 %v564_v10, %v408_v11 }
 0x24d   : > { %v410_v13 = vmul.f32 0.5, %v409_v12 }
 0x24f   : > { %v411_v14 = vsub.f32 1.5, %v410_v13 }
 0x251   : > { %v412_v15 = vmul.f32 %v564_v10, %v411_v14 }
 0x253   : > { %v416_v17 = vsel %vm415_vm9, %v564_v10, %v412_v15 }
 0x254   : > { %v417_v18 = vmul.f32 %v416_v17, %v400_v4 }
 0x256   : > { %v421_v20 = vmul.f32 %v557_v16, %v417_v18 }
 0x258   : > { %v425_v21 = vadd.f32 %v558_v19, %v421_v20 }
 0x25a   : > { %426 = vst.msk [vmem:[%s269_s14] sm:$0xff] %vm283_vm0, %v425_v21 }
 0x25b   : > { %592 = shalt.err (!%p589_p3)
}
 0x25c   : > { %515 = dma.vmem_to_hbm [thread:$0]  (%p708_p5), %s441_s28, 128, %s443_s15, %s428_s16  }
 0x25d PF: > { %p521_p4 = scmp.ge.s32.totalorder %s627_s27, 2  ;;  %s454_s18 = sand.u32 1, %s615_s24  }
 0x25e   : > { %s455_s8 = scalar_lea.sflag [#allocation3], %s454_s18 }
 0x25f   : > { %p518_p7 = pnand %p521_p4, %p712_p6 }
 0x261   : > { %p519_p8 = pneg %p518_p7 }
 0x263   : > { %610 = dma.done.wait (%p519_p8), %s455_s8, 128  }
 0x264   : > { %612 = vsyncadd (%p519_p8), %s455_s8, 4294967168  ;;  %p17_p9 = scmp.ge.s32.totalorder %s695_s30, 4   ;;  %s817_s24 = smov %s619_s25 }
 0x265   : > { %s818_s25 = smov %s623_s26  ;;  %s819_s26 = smov %s706_s10 }
 0x266   : > { %s820_s27 = smov %s695_s30  ;;  %19 = sbr.rel (!%p17_p9) target bundleno = 3 (0x3), region = 83 }
 0x26b   :  { %461 = vsyncpa [#allocation3], 1 }
 0x26c   :  { %463 = vsyncpa [#allocation3 + $0x1], 1 }

</bundles_post_ra>
